<compile_context>
chip_gen: v7x
topology: tpu7x:2x2x1
jax: 0.10.0
libtpu: 0.0.40
codegen_flags: <defaults>
</compile_context>

<pallas_src>
import functools

import jax
import jax.numpy as jnp
from jax import lax
from jax.experimental import pallas as pl
from jax.experimental.pallas import tpu as pltpu


# ---------------------------------------------------------------------------
# Kernels
# ---------------------------------------------------------------------------

def _iou_small_kernel(yp_ref, yt_ref, o_ref, *, factor, eps):
    """Single-shot path: whole (rows, R) slabs resident in VMEM."""
    yp = yp_ref[...].astype(jnp.float32)   # in-kernel cast: DMA ran at native width
    yt = yt_ref[...].astype(jnp.float32)
    prod = jnp.sum(yt * yp, axis=-1, keepdims=True)   # (rows, 1)
    plus = jnp.sum(yt + yp, axis=-1, keepdims=True)
    denom = plus + factor * prod
    if eps:                                 # trace-time elision when eps == 0
        denom = denom + eps
    o_ref[...] = (2.0 + factor) * prod / denom


def _iou_grid_kernel(yp_ref, yt_ref, o_ref, prod_acc, plus_acc, *,
                     factor, eps, total_r, tile_r):
    """Chunked-reduction path: grid = (row_tiles, r_tiles), reduction axis last."""
    k = pl.program_id(1)

    @pl.when(k == 0)
    def _():
        prod_acc[...] = jnp.zeros_like(prod_acc)
        plus_acc[...] = jnp.zeros_like(plus_acc)

    yp = yp_ref[...].astype(jnp.float32)
    yt = yt_ref[...].astype(jnp.float32)

    if total_r % tile_r != 0:
        # Last chunk is ragged: out-of-bounds lanes hold undefined DMA'd bytes,
        # so select them to 0 (jnp.where also neutralises NaN garbage).
        lane = lax.broadcasted_iota(jnp.int32, yp.shape, dimension=1)
        valid = (k * tile_r + lane) < total_r
        yp = jnp.where(valid, yp, 0.0)
        yt = jnp.where(valid, yt, 0.0)

    # VPU-only inner step: full-width accumulate, no cross-lane (XLU) work.
    prod_acc[...] += yt * yp
    plus_acc[...] += yt + yp

    @pl.when(k == pl.num_programs(1) - 1)
    def _():
        prod = jnp.sum(prod_acc[...], axis=-1, keepdims=True)   # XLU, once per row tile
        plus = jnp.sum(plus_acc[...], axis=-1, keepdims=True)
        denom = plus + factor * prod
        if eps:
            denom = denom + eps
        # Exact divide (not approx reciprocal): the finalize runs once per row
        # tile, so the cost is negligible and parity with the reference is kept.
        o_ref[...] = (2.0 + factor) * prod / denom


# ---------------------------------------------------------------------------
# Wrapper
# ---------------------------------------------------------------------------

# Single-shot path when both slabs (at f32-equivalent size) comfortably fit the
# smallest default scoped-VMEM limit (16 MiB on v5e), with room for temporaries.
_SMALL_LIMIT_BYTES = 2 << 20


def _native_kernel_dtype(x):
    """Keep dtypes Mosaic loads directly; the f32 cast then happens in-kernel."""
    if x.dtype in (jnp.float32, jnp.bfloat16, jnp.int8, jnp.uint8, jnp.int32):
        return x
    return x.astype(jnp.float32)


def _vmem_capacity_bytes():
    try:
        return int(pltpu.get_tpu_info().vmem_capacity_bytes)
    except Exception:
        return 64 * 1024 * 1024   # conservative fallback (v7x physical VMEM)


def iou(y_pred, y_true, *, mode='iou', axis=1, eps=0.0,
        force_grid=False, row_tile=None, tile_r=None):
    assert mode in ('iou', 'dice')
    assert y_pred.shape == y_true.shape
    ndim = y_pred.ndim
    assert 0 <= axis < ndim
    factor = {'iou': -1.0, 'dice': 0.0}[mode]

    if axis == 0:
        # Reference semantics for axis=0: reduce over dims 1..ndim-1 -> 1-D result.
        rows = y_pred.shape[0]
        out_final_shape = (rows,)
        yp2 = y_pred.reshape(rows, -1)
        yt2 = y_true.reshape(rows, -1)
    else:
        if axis != 1:
            # Bring the kept class axis next to batch (wrapper-level transpose).
            y_pred = jnp.moveaxis(y_pred, axis, 1)
            y_true = jnp.moveaxis(y_true, axis, 1)
        b, c = y_pred.shape[0], y_pred.shape[1]
        rows = b * c
        out_final_shape = (b, c)
        yp2 = y_pred.reshape(rows, -1)
        yt2 = y_true.reshape(rows, -1)

    r = yp2.shape[1]
    yp2 = _native_kernel_dtype(yp2)
    yt2 = _native_kernel_dtype(yt2)
    in_bytes = rows * r * (yp2.dtype.itemsize + yt2.dtype.itemsize)
    cost = pl.CostEstimate(flops=4 * rows * r + 5 * rows, transcendentals=0,
                           bytes_accessed=in_bytes + rows * 4)

    # TODO(synk): if rows (B*C) ever reaches >=128, emit a lane-dense (1, rows)
    # output slab instead of (rows, 1) to avoid masked vst.msk partial stores.

    small = (2 * rows * r * 4) <= _SMALL_LIMIT_BYTES and not force_grid
    if small:
        kernel = functools.partial(_iou_small_kernel, factor=factor, eps=eps)
        out = pl.pallas_call(
            kernel,
            out_shape=jax.ShapeDtypeStruct((rows, 1), jnp.float32),
            in_specs=[pl.BlockSpec(memory_space=pltpu.MemorySpace.VMEM),
                      pl.BlockSpec(memory_space=pltpu.MemorySpace.VMEM)],
            out_specs=pl.BlockSpec(memory_space=pltpu.MemorySpace.VMEM),
            cost_estimate=cost,
        )(yp2, yt2)
        return out.reshape(out_final_shape)

    # ---------------- chunked-reduction grid path ----------------
    vmem_bytes = _vmem_capacity_bytes()

    if row_tile is None:
        if rows <= 8:
            row_tile = rows                 # full dim (allowed even if < 8)
        else:
            # >= 2 row tiles when possible so v7x's two TensorCores split rows.
            row_tile = min(256, max(8, ((rows // 2) // 8) * 8))
    if tile_r is None:
        per_elem_in = yp2.dtype.itemsize + yt2.dtype.itemsize
        # Resident bytes per lane column: double-buffered inputs + 2 f32 accumulators.
        per_col = row_tile * (2 * per_elem_in + 2 * 4)
        budget = int(0.55 * vmem_bytes)
        tile_r = max(512, (budget // per_col) // 128 * 128)
        tile_r = min(tile_r, 16384)
    tile_r = min(tile_r, pl.cdiv(r, 128) * 128)

    grid = (pl.cdiv(rows, row_tile), pl.cdiv(r, tile_r))
    kernel = functools.partial(_iou_grid_kernel, factor=factor, eps=eps,
                               total_r=r, tile_r=tile_r)
    out = pl.pallas_call(
        kernel,
        out_shape=jax.ShapeDtypeStruct((rows, 1), jnp.float32),
        grid_spec=pltpu.PrefetchScalarGridSpec(
            num_scalar_prefetch=0,
            grid=grid,
            in_specs=[pl.BlockSpec((row_tile, tile_r), lambda i, k: (i, k)),
                      pl.BlockSpec((row_tile, tile_r), lambda i, k: (i, k))],
            out_specs=pl.BlockSpec((row_tile, 1), lambda i, k: (i, 0)),
            scratch_shapes=[pltpu.VMEM((row_tile, tile_r), jnp.float32),
                            pltpu.VMEM((row_tile, tile_r), jnp.float32)]),
        compiler_params=pltpu.CompilerParams(
            dimension_semantics=("parallel", "arbitrary"),
            vmem_limit_bytes=min(int(0.9 * vmem_bytes), 128 * 1024 * 1024)),
        cost_estimate=cost,
    )(yp2, yt2)
    return out.reshape(out_final_shape)


# ---------------------------------------------------------------------------
# Pure-JAX reference (matches the PyTorch module exactly)
# ---------------------------------------------------------------------------

def ref_iou(y_pred, y_true, *, mode='iou', axis=1, eps=0.0):
    factor = {'iou': -1.0, 'dice': 0.0}[mode]
    sum_axes = tuple(list(range(1, axis)) + list(range(axis + 1, y_pred.ndim)))
    yp = y_pred.astype(jnp.float32)
    yt = y_true.astype(jnp.float32)
    prod = (yt * yp).sum(sum_axes)
    plus = (yt + yp).sum(sum_axes)
    return (2.0 + factor) * prod / (plus + factor * prod + eps)


if __name__ == "__main__":
    key = jax.random.PRNGKey(0)
    k1, k2, k3, k4 = jax.random.split(key, 4)

    def check(out, ref, rtol=1e-5, atol=1e-6):
        assert out.shape == ref.shape, (out.shape, ref.shape)
        err = float(jnp.max(jnp.abs(out - ref)))
        assert jnp.allclose(out, ref, rtol=rtol, atol=atol), err

    # Positive, probability-like maps: plus - prod > 0, so no NaN (NaN only for
    # all-zero inputs with eps=0, which is intentional per the reference).
    y_pred = jax.random.uniform(k1, (2, 4, 16, 16), jnp.float32)
    y_true = jax.random.uniform(k2, (2, 4, 16, 16), jnp.float32)

    # 1) default: mode='iou', axis=1, f32 (single-shot path)
    out = jax.block_until_ready(iou(y_pred, y_true))
    check(out, ref_iou(y_pred, y_true))

    # 2) dice mode
    out = jax.block_until_ready(iou(y_pred, y_true, mode='dice'))
    check(out, ref_iou(y_pred, y_true, mode='dice'))

    # 3) bf16 inputs: native-width DMA + in-kernel f32 cast
    yp_bf = y_pred.astype(jnp.bfloat16)
    yt_bf = y_true.astype(jnp.bfloat16)
    out = jax.block_until_ready(iou(yp_bf, yt_bf))
    check(out, ref_iou(yp_bf, yt_bf))

    # 4) axis=0 edge case (1-D result)
    out = jax.block_until_ready(iou(y_pred, y_true, axis=0))
    check(out, ref_iou(y_pred, y_true, axis=0))

    # 5) chunked-reduction grid path exercised at small scale:
    #    rows=12 (ragged vs row_tile=8), R=1440 (ragged vs tile_r=512, 3 k-steps)
    yp_big = jax.random.uniform(k3, (3, 4, 24, 60), jnp.float32)
    yt_big = jax.random.uniform(k4, (3, 4, 24, 60), jnp.float32)
    out = jax.block_until_ready(
        iou(yp_big, yt_big, force_grid=True, row_tile=8, tile_r=512))
    check(out, ref_iou(yp_big, yt_big), rtol=1e-4)

    print("KERNEL_OK")
</pallas_src>

<mosaic_0001>
module attributes {stable_mosaic.version = 11 : i64} {
  func.func @_iou_small_kernel(%arg0: memref<8x256xf32, #tpu.memory_space<vmem>>, %arg1: memref<8x256xf32, #tpu.memory_space<vmem>>, %arg2: memref<8x1xf32, #tpu.memory_space<vmem>>) attributes {dimension_semantics = [], scalar_prefetch = 0 : i64, scratch_operands = 0 : i64, tpu.core_type = #tpu.core_type<tc>} {
    %c0 = arith.constant 0 : index
    %c0_0 = arith.constant 0 : index
    %0 = vector.load %arg0[%c0, %c0_0] : memref<8x256xf32, #tpu.memory_space<vmem>>, vector<8x256xf32>
    %c0_1 = arith.constant 0 : index
    %c0_2 = arith.constant 0 : index
    %1 = vector.load %arg1[%c0_1, %c0_2] : memref<8x256xf32, #tpu.memory_space<vmem>>, vector<8x256xf32>
    %2 = arith.mulf %1, %0 : vector<8x256xf32>
    %cst = arith.constant dense<0.000000e+00> : vector<8xf32>
    %3 = vector.multi_reduction <add>, %2, %cst [1] : vector<8x256xf32> to vector<8xf32>
    %4 = vector.shape_cast %3 : vector<8xf32> to vector<8x1xf32>
    %5 = arith.addf %1, %0 : vector<8x256xf32>
    %cst_3 = arith.constant dense<0.000000e+00> : vector<8xf32>
    %6 = vector.multi_reduction <add>, %5, %cst_3 [1] : vector<8x256xf32> to vector<8xf32>
    %7 = vector.shape_cast %6 : vector<8xf32> to vector<8x1xf32>
    %cst_4 = arith.constant -1.000000e+00 : f32
    %8 = vector.broadcast %cst_4 : f32 to vector<8x1xf32>
    %9 = arith.mulf %8, %4 : vector<8x1xf32>
    %10 = arith.addf %7, %9 : vector<8x1xf32>
    %cst_5 = arith.constant 1.000000e+00 : f32
    %11 = vector.broadcast %cst_5 : f32 to vector<8x1xf32>
    %12 = arith.mulf %11, %4 : vector<8x1xf32>
    %13 = arith.divf %12, %10 : vector<8x1xf32>
    %c0_6 = arith.constant 0 : index
    %c0_7 = arith.constant 0 : index
    %14 = vector.load %arg2[%c0_6, %c0_7] : memref<8x1xf32, #tpu.memory_space<vmem>>, vector<8x1xf32>
    tpu.vector_store %arg2[%c0_6, %c0_7], %13 {strides = array<i32>} : memref<8x1xf32, #tpu.memory_space<vmem>>, vector<8x1xf32>,
    return
  }
}

</mosaic_0001>

<bundles_post_ra>
// kernel: tpu_custom_call.1
= control target key start
LH: loop header
LB: loop body
LE: loop exit
PB: predicated region body
PF: predicated region fallthrough
CT: control target
= control target key end

     0   :  { %7 = vsyncpa [#allocation3], 0  ;;  %s157_s0 = inlined_call_operand.hbm [shape: f32[8,256], index: 0, kind: input, shape index: {}]   ;;  %s158_s1 = inlined_call_operand.hbm [shape: f32[8,256], index: 1, kind: input, shape index: {}]   ;;  %s159_s2 = inlined_call_operand.vmem [shape: f32[8,1], index: 2, kind: output, shape index: {}]  }
   0x1   :  { %8 = vsyncpa [#allocation5], 0  ;;  %s113_s9 = smov [#allocation2]   ;;  %s114_s11 = smov [#allocation4]  }
   0x2   :  { %s15_s10 = sshll.u32 %s113_s9, 4  ;;  %s25_s12 = sshll.u32 %s114_s11, 4  ;;  %s16_s10 = int_to_ptr.vmem [resolvable:$true] %s15_s10  ;;  %s26_s12 = int_to_ptr.vmem [resolvable:$true] %s25_s12 }
   0x3   :  { %s65_s15 = scalar_lea.hbm %s157_s0, 256 }
   0x4   :  { %p66_p0 = scmp.ne.s32.totalorder %s157_s0, %s65_s15  ;;  %p69_p1 = scmp.lt.u32.totalorder %s65_s15, %s157_s0 }
   0x6   :  { %p71_p2 = pnand %p69_p1, %p66_p0 }
   0x8   :  { %74 = shalt.err (!%p71_p2)
}
   0x9   :  { %s75_s20 = scalar_lea.vmem %s16_s10, 256  ;;  %p80_p4 = scmp.lt.s32.totalorder %s16_s10, %s16_s10 }
   0xa   :  { %p76_p3 = scmp.ne.s32.totalorder %s16_s10, %s75_s20  ;;  %p81_p5 = scmp.lt.s32.totalorder %s75_s20, %s75_s20 }
   0xc   :  { %p82_p6 = por %p81_p5, %p80_p4 }
   0xe   :  { %p83_p7 = pnand %p82_p6, %p76_p3 }
  0x10   :  { %86 = shalt.err (!%p83_p7)
}
  0x11   :  { %18 = dma.hbm_to_vmem [thread:$0]  %s157_s0, 256, %s16_s10, [#allocation3]  }
  0x12   :  { %s87_s25 = scalar_lea.hbm %s158_s1, 256 }
  0x13   :  { %p88_p8 = scmp.ne.s32.totalorder %s158_s1, %s87_s25  ;;  %p91_p9 = scmp.lt.u32.totalorder %s87_s25, %s158_s1 }
  0x15   :  { %p93_p10 = pnand %p91_p9, %p88_p8 }
  0x17   :  { %96 = shalt.err (!%p93_p10)
}
  0x18   :  { %s97_s30 = scalar_lea.vmem %s26_s12, 256  ;;  %p102_p12 = scmp.lt.s32.totalorder %s26_s12, %s26_s12 }
  0x19   :  { %p98_p11 = scmp.ne.s32.totalorder %s26_s12, %s97_s30  ;;  %p103_p13 = scmp.lt.s32.totalorder %s97_s30, %s97_s30 }
  0x1b   :  { %p104_p0 = por %p103_p13, %p102_p12 }
  0x1d   :  { %p105_p1 = pnand %p104_p0, %p98_p11 }
  0x1f   :  { %108 = shalt.err (!%p105_p1)
}
  0x20   :  { %28 = dma.hbm_to_vmem [thread:$0]  %s158_s1, 256, %s26_s12, [#allocation5]  }
  0x21   :  { %109 = dma.done.wait [#allocation3], 256  }
  0x22   :  { %110 = vsyncadd [#allocation3], 4294967040 }
  0x23   :  { %111 = dma.done.wait [#allocation5], 256  }
  0x24   :  { %112 = vsyncadd [#allocation5], 4294967040  ;;  %v35_v0 = vld [vmem:[#allocation2] sm:$0xff]  ;;  %v36_v1 = vld [vmem:[#allocation2 + $0x8] sm:$0xff]  ;;  %vm53_vm0 = vcmask 7168  }
  0x25   :  { %v37_v2 = vld [vmem:[#allocation4] sm:$0xff]  ;;  %v38_v3 = vld [vmem:[#allocation4 + $0x8] sm:$0xff] }
  0x26   :  { %v39_v4 = vmul.f32 %v37_v2, %v35_v0  ;;  %v40_v5 = vmul.f32 %v38_v3, %v36_v1  ;;  %v44_v6 = vadd.f32 %v37_v2, %v35_v0  ;;  %v45_v7 = vadd.f32 %v38_v3, %v36_v1 }
  0x28   :  { %v41_v8 = vadd.f32 %v40_v5, %v39_v4  ;;  %v46_v9 = vadd.f32 %v45_v7, %v44_v6 }
  0x2a   :  { %42 = vadd.xlane.f32.xlu0 %v41_v8 }
  0x2e   :  { %47 = vadd.xlane.f32.xlu0 %v46_v9 }
  0xb7   :  { %v43_v10 = vpop.xlane.xlu0 %42 }
  0xb8   :  { %v49_v11 = vmul.f32 -1.0, %v43_v10 }
  0xbb   :  { %v48_v12 = vpop.xlane.xlu0 %47 }
  0xbc   :  { %v50_v13 = vadd.f32 %v49_v11, %v48_v12 }
  0xbe   :  { %63 = vrcp.f32 %v50_v13 }
  0xc8   :  { %v64_v14 = vpop.eup %63 }
  0xc9   :  { %v52_v15 = vmul.f32 %v64_v14, %v43_v10 }
  0xcb   :  { %54 = vst.msk [vmem:[%s159_s2] sm:$0xff] %vm53_vm0, %v52_v15 }
  0xcc   :  { %59 = vsyncpa [#allocation3], 1 }
  0xcd   :  { %60 = vsyncpa [#allocation5], 1 }

</bundles_post_ra>
